<compile_context>
chip_gen: v7x
topology: tpu7x:2x2x1
jax: 0.10.0
libtpu: 0.0.40
codegen_flags: <defaults>
</compile_context>

<pallas_src>
import math
import functools

import jax
import jax.numpy as jnp
from jax.experimental import pallas as pl
from jax.experimental.pallas import tpu as pltpu


_LANES = 128


def _round_up(x, m):
    return ((x + m - 1) // m) * m


def _sigmoid(x):
    # sigmoid(x) = 0.5 * tanh(0.5 * x) + 0.5 : one EUP op instead of exp+recip.
    return 0.5 * jnp.tanh(0.5 * x) + 0.5


# --------------------------------------------------------------------------- #
# Kernel
# --------------------------------------------------------------------------- #
def _lstm_cell_kernel(x_ref, hx_ref, cx_ref, w_ref, b_ref,
                      hy_ref, cy_ref, xh_ref, *, I, Ip, H, Hp):
    cdt = w_ref.dtype                     # compute dtype = fused-weight dtype
    TB = x_ref.shape[0]

    # Pack [x | 0-pad | hx] into the fused-K scratch. All stores start at
    # lane-aligned offsets (0 and Ip). Weight rows [I:Ip] are zero, and the pad
    # lanes are cleared so garbage can never poison the contraction.
    if Ip > I:
        xh_ref[:, :Ip] = jnp.zeros((TB, Ip), dtype=cdt)
    xh_ref[:, :I] = x_ref[...].astype(cdt)        # in-kernel cast (no HBM copy)
    xh_ref[:, Ip:] = hx_ref[...].astype(cdt)

    # One MXU contraction over K = Ip + H, f32 accumulation, fused bias add.
    gates = (jnp.dot(xh_ref[...], w_ref[...],
                     preferred_element_type=jnp.float32)
             + b_ref[...])                                  # (TB, 4*Hp), f32

    # PyTorch chunk order: ingate, forgetgate, cellgate, outgate.
    # Each gate slab starts at the lane-aligned offset k*Hp.
    ingate     = _sigmoid(gates[:, 0 * Hp:0 * Hp + H])
    forgetgate = _sigmoid(gates[:, 1 * Hp:1 * Hp + H])
    cellgate   = jnp.tanh(gates[:, 2 * Hp:2 * Hp + H])
    outgate    = _sigmoid(gates[:, 3 * Hp:3 * Hp + H])

    cx = cx_ref[...].astype(jnp.float32)
    cy = cx * forgetgate + ingate * cellgate
    hy = outgate * jnp.tanh(cy)

    hy_ref[...] = hy.astype(hy_ref.dtype)
    cy_ref[...] = cy.astype(cy_ref.dtype)


# --------------------------------------------------------------------------- #
# Wrappers
# --------------------------------------------------------------------------- #
def prepare_lstm_params(w_ih, b_ih, w_hh, b_hh, *, compute_dtype=jnp.float32):
    """One-time parameter prep (hoist out of any recurrent loop).

    w_ih: (4H, I), w_hh: (4H, H), biases: (4H,)
      -> fused weight (Ip+H, 4*Hp) in compute_dtype, fused bias (1, 4*Hp) f32,
    with Ip = ceil(I/128)*128 (zero rows for the padded x-features) and each
    gate's columns zero-padded to Hp = ceil(H/128)*128 so all in-kernel
    stores/slices are lane-aligned.
    """
    G, I = w_ih.shape
    H = w_hh.shape[1]
    assert G == 4 * H and w_hh.shape[0] == G
    Ip = _round_up(I, _LANES)
    Hp = _round_up(H, _LANES)

    w_x = w_ih.T                                             # (I, 4H)
    w_h = w_hh.T                                             # (H, 4H)
    if Ip != I:
        w_x = jnp.pad(w_x, ((0, Ip - I), (0, 0)))            # zero rows
    w = jnp.concatenate([w_x, w_h], axis=0)                  # (Ip+H, 4H)
    b = b_ih.astype(jnp.float32) + b_hh.astype(jnp.float32)  # (4H,)
    if Hp != H:
        w = jnp.pad(w.reshape(Ip + H, 4, H), ((0, 0), (0, 0), (0, Hp - H)))
        b = jnp.pad(b.reshape(4, H), ((0, 0), (0, Hp - H)))
    w = w.reshape(Ip + H, 4 * Hp).astype(compute_dtype)
    b = b.reshape(1, 4 * Hp)
    return w, b


def _vmem_limit_bytes(vmem_est):
    try:
        cap = int(pltpu.get_tpu_info().vmem_capacity_bytes)
    except Exception:
        cap = 64 << 20                    # safe lower bound (v7x physical VMEM)
    cap = int(cap * 0.85)                 # headroom for the compiler
    return int(min(max(2 * vmem_est + (8 << 20), 32 << 20), cap))


def lstm_cell_forward_prepared(x, hx, cx, w_fused, bias, *,
                               batch_tile=512, hy_dtype=None, interpret=False):
    """LSTMCell forward with pre-prepared (fused, lane-padded) parameters."""
    B, I = x.shape
    H = hx.shape[1]
    Hp = bias.shape[1] // 4
    K = w_fused.shape[0]
    Ip = K - H
    assert Ip >= I and Hp >= H
    assert w_fused.shape == (K, 4 * Hp) and bias.shape == (1, 4 * Hp)
    assert hx.shape == (B, H) and cx.shape == (B, H)

    compute_dtype = w_fused.dtype
    hy_dtype = compute_dtype if hy_dtype is None else hy_dtype

    # ---- batch tiling: activations pipelined, weights/bias VMEM-resident ----
    if B <= batch_tile:
        TB = B
    else:
        align = 256 if batch_tile >= 256 else 16      # feed full MXU M-rows
        TB = max(align, (batch_tile // align) * align)
    grid = (pl.cdiv(B, TB),)          # Pallas masks the partial last block

    # ---- VMEM budget (resident weights counted double-buffered = honest) ----
    cbytes = jnp.dtype(compute_dtype).itemsize
    G = 4 * Hp
    vmem_est = (
        2 * TB * I * x.dtype.itemsize                       # x tiles
        + 2 * TB * H * hx.dtype.itemsize                    # hx tiles
        + 2 * TB * H * cx.dtype.itemsize                    # cx tiles
        + 2 * TB * H * jnp.dtype(hy_dtype).itemsize         # hy tiles
        + 2 * TB * H * 4                                    # cy tiles (f32)
        + 2 * K * G * cbytes + 2 * G * 4                    # weights + bias
        + TB * K * cbytes                                   # [x|hx] scratch
        + TB * G * 4 + 8 * TB * Hp * 4                      # gates + temps
    )

    kernel = functools.partial(_lstm_cell_kernel, I=I, Ip=Ip, H=H, Hp=Hp)

    hy, cy = pl.pallas_call(
        kernel,
        out_shape=(jax.ShapeDtypeStruct((B, H), hy_dtype),
                   jax.ShapeDtypeStruct((B, H), jnp.float32)),
        grid=grid,
        in_specs=[
            pl.BlockSpec((TB, I), lambda b: (b, 0)),        # x tile
            pl.BlockSpec((TB, H), lambda b: (b, 0)),        # hx tile
            pl.BlockSpec((TB, H), lambda b: (b, 0)),        # cx tile
            pl.BlockSpec((K, G), lambda b: (0, 0)),         # fused W (resident)
            pl.BlockSpec((1, G), lambda b: (0, 0)),         # fused bias (resident)
        ],
        out_specs=(pl.BlockSpec((TB, H), lambda b: (b, 0)),
                   pl.BlockSpec((TB, H), lambda b: (b, 0))),
        scratch_shapes=[pltpu.VMEM((TB, K), compute_dtype)],
        compiler_params=pltpu.CompilerParams(
            dimension_semantics=("parallel",),
            vmem_limit_bytes=_vmem_limit_bytes(vmem_est)),
        interpret=interpret,
    )(x, hx, cx, w_fused, bias)
    return hy, cy


def lstm_cell_forward(x, hidden, w_ih, b_ih, w_hh, b_hh, *,
                      batch_tile=512, compute_dtype=jnp.float32,
                      hy_dtype=None):
    """Drop-in equivalent of LSTMCell.forward(x, (hx, cx)) -> (hy, cy)."""
    hx, cx = hidden
    x = x.reshape(-1, x.shape[1])                 # mirrors x.view(-1, x.size(1))
    params = prepare_lstm_params(w_ih, b_ih, w_hh, b_hh,
                                 compute_dtype=compute_dtype)
    return lstm_cell_forward_prepared(x, hx, cx, *params,
                                      batch_tile=batch_tile, hy_dtype=hy_dtype)


# --------------------------------------------------------------------------- #
# Pure-JAX reference (mirrors the PyTorch forward exactly)
# --------------------------------------------------------------------------- #
def lstm_cell_reference(x, hx, cx, w_ih, b_ih, w_hh, b_hh):
    gates = x @ w_ih.T + b_ih + hx @ w_hh.T + b_hh
    ingate, forgetgate, cellgate, outgate = jnp.split(gates, 4, axis=1)
    ingate = jax.nn.sigmoid(ingate)
    forgetgate = jax.nn.sigmoid(forgetgate)
    cellgate = jnp.tanh(cellgate)
    outgate = jax.nn.sigmoid(outgate)
    cy = cx * forgetgate + ingate * cellgate
    hy = outgate * jnp.tanh(cy)
    return hy, cy


# --------------------------------------------------------------------------- #
# Self-test
# --------------------------------------------------------------------------- #
if __name__ == "__main__":
    input_size = 16
    hidden_size = 32
    G = 4 * hidden_size

    key = jax.random.PRNGKey(0)
    k_wih, k_bih, k_whh, k_bhh, k_x, k_h, k_c, k_x2, k_h2, k_c2 = \
        jax.random.split(key, 10)

    # reset_parameters: U(-std, std), std = 1/sqrt(hidden_size)
    std = 1.0 / math.sqrt(hidden_size)
    w_ih = jax.random.uniform(k_wih, (G, input_size), jnp.float32, -std, std)
    b_ih = jax.random.uniform(k_bih, (G,), jnp.float32, -std, std)
    w_hh = jax.random.uniform(k_whh, (G, hidden_size), jnp.float32, -std, std)
    b_hh = jax.random.uniform(k_bhh, (G,), jnp.float32, -std, std)

    # ---- small-batch test (single tile), f32 compute ----
    B = 2
    x = jax.random.normal(k_x, (B, input_size), jnp.float32)
    hx = jax.random.normal(k_h, (B, hidden_size), jnp.float32)
    cx = jax.random.normal(k_c, (B, hidden_size), jnp.float32)

    hy, cy = lstm_cell_forward(x, (hx, cx), w_ih, b_ih, w_hh, b_hh)
    jax.block_until_ready((hy, cy))
    hy_r, cy_r = lstm_cell_reference(x, hx, cx, w_ih, b_ih, w_hh, b_hh)
    assert jnp.allclose(hy, hy_r, atol=1e-5, rtol=1e-5)
    assert jnp.allclose(cy, cy_r, atol=1e-5, rtol=1e-5)

    # ---- larger-batch test exercising the batch grid + partial last block ----
    B2 = 300
    x2 = jax.random.normal(k_x2, (B2, input_size), jnp.float32)
    hx2 = jax.random.normal(k_h2, (B2, hidden_size), jnp.float32)
    cx2 = jax.random.normal(k_c2, (B2, hidden_size), jnp.float32)

    hy2, cy2 = lstm_cell_forward(x2, (hx2, cx2), w_ih, b_ih, w_hh, b_hh,
                                 batch_tile=128)
    jax.block_until_ready((hy2, cy2))
    hy2_r, cy2_r = lstm_cell_reference(x2, hx2, cx2, w_ih, b_ih, w_hh, b_hh)
    assert jnp.allclose(hy2, hy2_r, atol=1e-5, rtol=1e-5)
    assert jnp.allclose(cy2, cy2_r, atol=1e-5, rtol=1e-5)

    # ---- bf16 compute path (bf16 weights / activations / hy, f32 accum+cy) ----
    hy3, cy3 = lstm_cell_forward(x2, (hx2, cx2), w_ih, b_ih, w_hh, b_hh,
                                 batch_tile=128, compute_dtype=jnp.bfloat16)
    jax.block_until_ready((hy3, cy3))
    assert jnp.allclose(hy3, hy2_r, atol=3e-2, rtol=3e-2)
    assert jnp.allclose(cy3, cy2_r, atol=3e-2, rtol=3e-2)

    print("KERNEL_OK")
</pallas_src>

<mosaic_0001>
module attributes {stable_mosaic.version = 11 : i64} {
  func.func @_lstm_cell_kernel(%arg0: i32, %arg1: memref<2x16xf32, #tpu.memory_space<vmem>>, %arg2: memref<2x32xf32, #tpu.memory_space<vmem>>, %arg3: memref<2x32xf32, #tpu.memory_space<vmem>>, %arg4: memref<160x512xf32, #tpu.memory_space<vmem>>, %arg5: memref<1x512xf32, #tpu.memory_space<vmem>>, %arg6: memref<2x32xf32, #tpu.memory_space<vmem>>, %arg7: memref<2x32xf32, #tpu.memory_space<vmem>>, %arg8: memref<2x160xf32, #tpu.memory_space<vmem>>) attributes {dimension_semantics = [#tpu.dimension_semantics<parallel>], iteration_bounds = array<i64: 1>, scalar_prefetch = 0 : i64, scratch_operands = 1 : i64, tpu.core_type = #tpu.core_type<tc>, window_params = [{transform_indices = @transform_0, window_bounds = array<i64: 2, 16>}, {transform_indices = @transform_1, window_bounds = array<i64: 2, 32>}, {transform_indices = @transform_2, window_bounds = array<i64: 2, 32>}, {pipeline_mode = #tpu.pipeline_mode<synchronous>, transform_indices = @transform_3, window_bounds = array<i64: 160, 512>}, {pipeline_mode = #tpu.pipeline_mode<synchronous>, transform_indices = @transform_4, window_bounds = array<i64: 1, 512>}, {transform_indices = @transform_5, window_bounds = array<i64: 2, 32>}, {transform_indices = @transform_6, window_bounds = array<i64: 2, 32>}]} {
    %cst = arith.constant 0.000000e+00 : f32
    %0 = vector.broadcast %cst : f32 to vector<2x128xf32>
    %c0 = arith.constant 0 : index
    %c0_0 = arith.constant 0 : index
    %1 = vector.load %arg8[%c0, %c0_0] : memref<2x160xf32, #tpu.memory_space<vmem>>, vector<2x128xf32>
    tpu.vector_store %arg8[%c0, %c0_0], %0 {strides = array<i32>} : memref<2x160xf32, #tpu.memory_space<vmem>>, vector<2x128xf32>,
    %c0_1 = arith.constant 0 : index
    %c0_2 = arith.constant 0 : index
    %2 = vector.load %arg1[%c0_1, %c0_2] : memref<2x16xf32, #tpu.memory_space<vmem>>, vector<2x16xf32>
    %c0_3 = arith.constant 0 : index
    %c0_4 = arith.constant 0 : index
    %3 = vector.load %arg8[%c0_3, %c0_4] : memref<2x160xf32, #tpu.memory_space<vmem>>, vector<2x16xf32>
    tpu.vector_store %arg8[%c0_3, %c0_4], %2 {strides = array<i32>} : memref<2x160xf32, #tpu.memory_space<vmem>>, vector<2x16xf32>,
    %c0_5 = arith.constant 0 : index
    %c0_6 = arith.constant 0 : index
    %4 = vector.load %arg2[%c0_5, %c0_6] : memref<2x32xf32, #tpu.memory_space<vmem>>, vector<2x32xf32>
    %c0_7 = arith.constant 0 : index
    %c128 = arith.constant 128 : index
    %5 = vector.load %arg8[%c0_7, %c128] : memref<2x160xf32, #tpu.memory_space<vmem>>, vector<2x32xf32>
    tpu.vector_store %arg8[%c0_7, %c128], %4 {strides = array<i32>} : memref<2x160xf32, #tpu.memory_space<vmem>>, vector<2x32xf32>,
    %c0_8 = arith.constant 0 : index
    %c0_9 = arith.constant 0 : index
    %6 = vector.load %arg8[%c0_8, %c0_9] : memref<2x160xf32, #tpu.memory_space<vmem>>, vector<2x160xf32>
    %c0_10 = arith.constant 0 : index
    %c0_11 = arith.constant 0 : index
    %7 = vector.load %arg4[%c0_10, %c0_11] : memref<160x512xf32, #tpu.memory_space<vmem>>, vector<160x512xf32>
    %cst_12 = arith.constant dense<0.000000e+00> : vector<2x512xf32>
    %8 = tpu.matmul %6, %7, %cst_12 {dimension_numbers = #tpu.dot_dimension_numbers<[1], [0], [0], [1], [0, 0, 1, 1], [], []>} : vector<2x160xf32>, vector<160x512xf32>, vector<2x512xf32> -> vector<2x512xf32>
    %c0_13 = arith.constant 0 : index
    %c0_14 = arith.constant 0 : index
    %9 = vector.load %arg5[%c0_13, %c0_14] : memref<1x512xf32, #tpu.memory_space<vmem>>, vector<1x512xf32>
    %10 = vector.broadcast %9 : vector<1x512xf32> to vector<2x512xf32>
    %11 = arith.addf %8, %10 : vector<2x512xf32>
    %12 = vector.extract_strided_slice %11 {offsets = [0, 0], sizes = [2, 32], strides = [1, 1]} : vector<2x512xf32> to vector<2x32xf32>
    %cst_15 = arith.constant 5.000000e-01 : f32
    %13 = vector.broadcast %cst_15 : f32 to vector<2x32xf32>
    %14 = arith.mulf %13, %12 : vector<2x32xf32>
    %15 = math.tanh %14 : vector<2x32xf32>
    %cst_16 = arith.constant 5.000000e-01 : f32
    %16 = vector.broadcast %cst_16 : f32 to vector<2x32xf32>
    %17 = arith.mulf %16, %15 : vector<2x32xf32>
    %cst_17 = arith.constant 5.000000e-01 : f32
    %18 = vector.broadcast %cst_17 : f32 to vector<2x32xf32>
    %19 = arith.addf %17, %18 : vector<2x32xf32>
    %20 = vector.extract_strided_slice %11 {offsets = [0, 128], sizes = [2, 32], strides = [1, 1]} : vector<2x512xf32> to vector<2x32xf32>
    %cst_18 = arith.constant 5.000000e-01 : f32
    %21 = vector.broadcast %cst_18 : f32 to vector<2x32xf32>
    %22 = arith.mulf %21, %20 : vector<2x32xf32>
    %23 = math.tanh %22 : vector<2x32xf32>
    %cst_19 = arith.constant 5.000000e-01 : f32
    %24 = vector.broadcast %cst_19 : f32 to vector<2x32xf32>
    %25 = arith.mulf %24, %23 : vector<2x32xf32>
    %cst_20 = arith.constant 5.000000e-01 : f32
    %26 = vector.broadcast %cst_20 : f32 to vector<2x32xf32>
    %27 = arith.addf %25, %26 : vector<2x32xf32>
    %28 = vector.extract_strided_slice %11 {offsets = [0, 256], sizes = [2, 32], strides = [1, 1]} : vector<2x512xf32> to vector<2x32xf32>
    %29 = math.tanh %28 : vector<2x32xf32>
    %30 = vector.extract_strided_slice %11 {offsets = [0, 384], sizes = [2, 32], strides = [1, 1]} : vector<2x512xf32> to vector<2x32xf32>
    %cst_21 = arith.constant 5.000000e-01 : f32
    %31 = vector.broadcast %cst_21 : f32 to vector<2x32xf32>
    %32 = arith.mulf %31, %30 : vector<2x32xf32>
    %33 = math.tanh %32 : vector<2x32xf32>
    %cst_22 = arith.constant 5.000000e-01 : f32
    %34 = vector.broadcast %cst_22 : f32 to vector<2x32xf32>
    %35 = arith.mulf %34, %33 : vector<2x32xf32>
    %cst_23 = arith.constant 5.000000e-01 : f32
    %36 = vector.broadcast %cst_23 : f32 to vector<2x32xf32>
    %37 = arith.addf %35, %36 : vector<2x32xf32>
    %c0_24 = arith.constant 0 : index
    %c0_25 = arith.constant 0 : index
    %38 = vector.load %arg3[%c0_24, %c0_25] : memref<2x32xf32, #tpu.memory_space<vmem>>, vector<2x32xf32>
    %39 = arith.mulf %38, %27 : vector<2x32xf32>
    %40 = arith.mulf %19, %29 : vector<2x32xf32>
    %41 = arith.addf %39, %40 : vector<2x32xf32>
    %42 = math.tanh %41 : vector<2x32xf32>
    %43 = arith.mulf %37, %42 : vector<2x32xf32>
    %c0_26 = arith.constant 0 : index
    %c0_27 = arith.constant 0 : index
    %44 = vector.load %arg6[%c0_26, %c0_27] : memref<2x32xf32, #tpu.memory_space<vmem>>, vector<2x32xf32>
    tpu.vector_store %arg6[%c0_26, %c0_27], %43 {strides = array<i32>} : memref<2x32xf32, #tpu.memory_space<vmem>>, vector<2x32xf32>,
    %c0_28 = arith.constant 0 : index
    %c0_29 = arith.constant 0 : index
    %45 = vector.load %arg7[%c0_28, %c0_29] : memref<2x32xf32, #tpu.memory_space<vmem>>, vector<2x32xf32>
    tpu.vector_store %arg7[%c0_28, %c0_29], %41 {strides = array<i32>} : memref<2x32xf32, #tpu.memory_space<vmem>>, vector<2x32xf32>,
    return
  }
  func.func @transform_0(%arg0: i32) -> (i32, i32) {
    %c0_i32 = arith.constant 0 : i32
    %c0_i32_0 = arith.constant 0 : i32
    return %arg0, %c0_i32 : i32, i32
  }
  func.func @transform_1(%arg0: i32) -> (i32, i32) {
    %c0_i32 = arith.constant 0 : i32
    %c0_i32_0 = arith.constant 0 : i32
    return %arg0, %c0_i32 : i32, i32
  }
  func.func @transform_2(%arg0: i32) -> (i32, i32) {
    %c0_i32 = arith.constant 0 : i32
    %c0_i32_0 = arith.constant 0 : i32
    return %arg0, %c0_i32 : i32, i32
  }
  func.func @transform_3(%arg0: i32) -> (i32, i32) {
    %c0_i32 = arith.constant 0 : i32
    %c0_i32_0 = arith.constant 0 : i32
    %c0_i32_1 = arith.constant 0 : i32
    return %c0_i32, %c0_i32_0 : i32, i32
  }
  func.func @transform_4(%arg0: i32) -> (i32, i32) {
    %c0_i32 = arith.constant 0 : i32
    %c0_i32_0 = arith.constant 0 : i32
    %c0_i32_1 = arith.constant 0 : i32
    return %c0_i32, %c0_i32_0 : i32, i32
  }
  func.func @transform_5(%arg0: i32) -> (i32, i32) {
    %c0_i32 = arith.constant 0 : i32
    %c0_i32_0 = arith.constant 0 : i32
    return %arg0, %c0_i32 : i32, i32
  }
  func.func @transform_6(%arg0: i32) -> (i32, i32) {
    %c0_i32 = arith.constant 0 : i32
    %c0_i32_0 = arith.constant 0 : i32
    return %arg0, %c0_i32 : i32, i32
  }
}

</mosaic_0001>

<bundles_post_ra>
// kernel: tpu_custom_call.1
= control target key start
LH: loop header
LB: loop body
LE: loop exit
PB: predicated region body
PF: predicated region fallthrough
CT: control target
= control target key end

     0   :  { %12 = vsyncpa [#allocation4], 0  ;;  %s709_s0 = inlined_call_operand.hbm [shape: f32[2,16], index: 0, kind: input, shape index: {}]   ;;  %s710_s1 = inlined_call_operand.vmem [shape: f32[2,32], index: 1, kind: input, shape index: {}]   ;;  %s711_s2 = inlined_call_operand.hbm [shape: f32[2,32], index: 2, kind: input, shape index: {}]   ;;  %s712_s3 = inlined_call_operand.hbm [shape: f32[160,512], index: 3, kind: input, shape index: {}]   ;;  %s713_s4 = inlined_call_operand.vmem [shape: f32[1,512], index: 4, kind: input, shape index: {}]   ;;  %s714_s5 = inlined_call_operand.hbm [shape: f32[2,32], index: 5, kind: output, shape index: {0}]   ;;  %s715_s6 = inlined_call_operand.hbm [shape: f32[2,32], index: 6, kind: output, shape index: {1}]  }
   0x1   :  { %13 = vsyncpa [#allocation7], 0 }
   0x2   :  { %14 = vsyncpa [#allocation5], 0 }
   0x3   :  { %15 = vsyncpa [#allocation11], 0  ;;  %s596_s21 = smov [#allocation6]   ;;  %s597_s23 = smov [#allocation3]  }
   0x4   :  { %s34_s22 = sshll.u32 %s596_s21, 4  ;;  %s22_s24 = sshll.u32 %s597_s23, 4  ;;  %s35_s22 = int_to_ptr.vmem [resolvable:$true] %s34_s22  ;;  %s23_s24 = int_to_ptr.vmem [resolvable:$true] %s22_s24 }
   0x5   :  { %s478_s27 = scalar_lea.hbm %s711_s2, 32 }
   0x6   :  { %p479_p0 = scmp.ne.s32.totalorder %s711_s2, %s478_s27  ;;  %p482_p1 = scmp.lt.u32.totalorder %s478_s27, %s711_s2 }
   0x8   :  { %p484_p2 = pnand %p482_p1, %p479_p0 }
   0xa   :  { %487 = shalt.err (!%p484_p2)
}
   0xb   :  { %s488_s8 = scalar_lea.vmem %s35_s22, 32  ;;  %p493_p4 = scmp.lt.s32.totalorder %s35_s22, %s35_s22 }
   0xc   :  { %p489_p3 = scmp.ne.s32.totalorder %s35_s22, %s488_s8  ;;  %p494_p5 = scmp.lt.s32.totalorder %s488_s8, %s488_s8 }
   0xe   :  { %p495_p6 = por %p494_p5, %p493_p4 }
  0x10   :  { %p496_p7 = pnand %p495_p6, %p489_p3 }
  0x12   :  { %499 = shalt.err (!%p496_p7)
}
  0x13   :  { %37 = dma.hbm_to_vmem [thread:$0]  %s711_s2, 32, %s35_s22, [#allocation7]  }
  0x14   :  { %s500_s13 = scalar_lea.hbm %s709_s0, 32 }
  0x15   :  { %p501_p8 = scmp.ne.s32.totalorder %s709_s0, %s500_s13  ;;  %p504_p9 = scmp.lt.u32.totalorder %s500_s13, %s709_s0 }
  0x17   :  { %p506_p10 = pnand %p504_p9, %p501_p8 }
  0x19   :  { %509 = shalt.err (!%p506_p10)
}
  0x1a   :  { %s510_s18 = scalar_lea.vmem %s23_s24, 32  ;;  %p515_p12 = scmp.lt.s32.totalorder %s23_s24, %s23_s24 }
  0x1b   :  { %p511_p11 = scmp.ne.s32.totalorder %s23_s24, %s510_s18  ;;  %p516_p13 = scmp.lt.s32.totalorder %s510_s18, %s510_s18 }
  0x1d   :  { %p517_p0 = por %p516_p13, %p515_p12 }
  0x1f   :  { %p518_p1 = pnand %p517_p0, %p511_p11 }
  0x21   :  { %521 = shalt.err (!%p518_p1)
}
  0x22   :  { %25 = dma.hbm_to_vmem [thread:$0]  %s709_s0, 32, %s23_s24, [#allocation4]  }
  0x23   :  { %s598_s20 = smov [#allocation8]   ;;  %s522_s25 = scalar_lea.hbm %s712_s3, 10240 }
  0x24   :  { %s43_s21 = sshll.u32 %s598_s20, 4  ;;  %p523_p2 = scmp.ne.s32.totalorder %s712_s3, %s522_s25  ;;  %s44_s21 = int_to_ptr.vmem [resolvable:$true] %s43_s21 }
  0x25   :  { %p526_p3 = scmp.lt.u32.totalorder %s522_s25, %s712_s3 }
  0x27   :  { %p528_p4 = pnand %p526_p3, %p523_p2 }
  0x29   :  { %531 = shalt.err (!%p528_p4)
}
  0x2a   :  { %s532_s30 = scalar_lea.vmem %s44_s21, 10240  ;;  %p537_p6 = scmp.lt.s32.totalorder %s44_s21, %s44_s21 }
  0x2b   :  { %p533_p5 = scmp.ne.s32.totalorder %s44_s21, %s532_s30  ;;  %p538_p7 = scmp.lt.s32.totalorder %s532_s30, %s532_s30 }
  0x2d   :  { %p539_p8 = por %p538_p7, %p537_p6 }
  0x2f   :  { %p540_p9 = pnand %p539_p8, %p533_p5 }
  0x31   :  { %543 = shalt.err (!%p540_p9)
}
  0x32   :  { %s599_s0 = smov 512   ;;  %s600_s24 = smov 32  }
  0x33   :  { %49 = dma.hbm_to_vmem [thread:$0]  %s712_s3, 10240, %s44_s21, [#allocation7], %s599_s0, %s599_s0, %s600_s24  }
  0x34   :  { %588 = dma.done.wait [#allocation4], 32  }
  0x35   :  { %589 = vsyncadd [#allocation4], 4294967264 }
  0x36   :  { %590 = dma.done.wait [#allocation7], 10272  }
  0x37   :  { %591 = vsyncadd [#allocation7], 4294957024  ;;  %v601_v0 = vmov 0.0   ;;  %v70_v1 = vld [vmem:[#allocation8 + $0x8] sm:$0xff]  ;;  %v69_v3 = vld [vmem:[#allocation8] sm:$0xff]  ;;  %vm63_vm0 = vcmask 123904  }
  0x38   :  { %61 = vst [vmem:[#allocation2] sm:$0x3] %v601_v0  ;;  %v74_v2 = vld [vmem:[#allocation8 + $0x28] sm:$0xff]  ;;  %v73_v5 = vld [vmem:[#allocation8 + $0x20] sm:$0xff]  ;;  %v72_v12 = vld [vmem:[#allocation8 + $0x18] sm:$0xff]  ;;  %vm66_vm1 = vcmask 254976  }
  0x39   :  { %v380_v4 = vpack.c.bf16 %v74_v2, %v70_v1  ;;  %v78_v6 = vld [vmem:[#allocation8 + $0x48] sm:$0xff]  ;;  %v382_v8 = vpack.c.bf16 %v73_v5, %v69_v3  ;;  %v77_v10 = vld [vmem:[#allocation8 + $0x40] sm:$0xff]  ;;  %v76_v13 = vld [vmem:[#allocation8 + $0x38] sm:$0xff]  ;;  %vm181_vm2 = vcmask 261120  }
  0x3a   :  { %v82_v7 = vld [vmem:[#allocation8 + $0x68] sm:$0xff]  ;;  %v81_v11 = vld [vmem:[#allocation8 + $0x60] sm:$0xff]  ;;  %v71_v14 = vld [vmem:[#allocation8 + $0x10] sm:$0xff]  ;;  %v420_v17 = vpack.c.bf16 %v76_v13, %v72_v12 }
  0x3b   :  { %v384_v9 = vpack.c.bf16 %v82_v7, %v78_v6  ;;  %381 = vmatprep.subr.bf16.mxu0 %v380_v4  ;;  %v75_v15 = vld [vmem:[#allocation8 + $0x30] sm:$0xff]  ;;  %v386_v16 = vpack.c.bf16 %v81_v11, %v77_v10  ;;  %v86_v19 = vld [vmem:[#allocation8 + $0x88] sm:$0xff]  ;;  %v85_v21 = vld [vmem:[#allocation8 + $0x80] sm:$0xff] }
  0x3c   :  { %383 = vmatpush1.bf16.msra.mxu0 %v382_v8  ;;  %v422_v18 = vpack.c.bf16 %v75_v15, %v71_v14  ;;  %v90_v20 = vld [vmem:[#allocation8 + $0xa8] sm:$0xff]  ;;  %v89_v23 = vld [vmem:[#allocation8 + $0xa0] sm:$0xff]  ;;  %v80_v24 = vld [vmem:[#allocation8 + $0x58] sm:$0xff]  ;;  %421 = vmatprep.subr.bf16.mxu1 %v420_v17 }
  0x3d   :  { %385 = vmatprep.subr.bf16.mxu0 %v384_v9  ;;  %v388_v22 = vpack.c.bf16 %v90_v20, %v86_v19  ;;  %v84_v25 = vld [vmem:[#allocation8 + $0x78] sm:$0xff]  ;;  %v79_v27 = vld [vmem:[#allocation8 + $0x50] sm:$0xff]  ;;  %v94_v29 = vld [vmem:[#allocation8 + $0xc8] sm:$0xff]  ;;  %v390_v32 = vpack.c.bf16 %v89_v23, %v85_v21 }
  0x3e   :  { %v424_v26 = vpack.c.bf16 %v84_v25, %v80_v24  ;;  %v83_v28 = vld [vmem:[#allocation8 + $0x70] sm:$0xff]  ;;  %423 = vmatpush1.bf16.msra.mxu1 %v422_v18  ;;  %v98_v31 = vld [vmem:[#allocation8 + $0xe8] sm:$0xff]  ;;  %v88_v33 = vld [vmem:[#allocation8 + $0x98] sm:$0xff] }
  0x3f   :  { %v426_v30 = vpack.c.bf16 %v83_v28, %v79_v27  ;;  %v92_v34 = vld [vmem:[#allocation8 + $0xb8] sm:$0xff]  ;;  %v87_v35 = vld [vmem:[#allocation8 + $0x90] sm:$0xff]  ;;  %v392_v36 = vpack.c.bf16 %v98_v31, %v94_v29  ;;  %v93_v37 = vld [vmem:[#allocation8 + $0xc0] sm:$0xff] }
  0x40   :  { %387 = vmatpush1.bf16.msra.mxu0 %v386_v16  ;;  %425 = vmatprep.subr.bf16.mxu1 %v424_v26  ;;  %v97_v38 = vld [vmem:[#allocation8 + $0xe0] sm:$0xff]  ;;  %v428_v39 = vpack.c.bf16 %v92_v34, %v88_v33  ;;  %v91_v40 = vld [vmem:[#allocation8 + $0xb0] sm:$0xff]  ;;  %v102_v41 = vld [vmem:[#allocation8 + $0x108] sm:$0xff] }
  0x41   :  { %389 = vmatprep.subr.bf16.mxu0 %v388_v22  ;;  %v106_v42 = vld [vmem:[#allocation8 + $0x128] sm:$0xff]  ;;  %v96_v43 = vld [vmem:[#allocation8 + $0xd8] sm:$0xff]  ;;  %v430_v44 = vpack.c.bf16 %v91_v40, %v87_v35  ;;  %v394_v46 = vpack.c.bf16 %v97_v38, %v93_v37  ;;  %v101_v47 = vld [vmem:[#allocation8 + $0x100] sm:$0xff] }
  0x42   :  { %427 = vmatpush1.bf16.msra.mxu1 %v426_v30  ;;  %v100_v45 = vld [vmem:[#allocation8 + $0xf8] sm:$0xff]  ;;  %v95_v49 = vld [vmem:[#allocation8 + $0xd0] sm:$0xff]  ;;  %v396_v51 = vpack.c.bf16 %v106_v42, %v102_v41  ;;  %v105_v52 = vld [vmem:[#allocation8 + $0x120] sm:$0xff] }
  0x43   :  { %429 = vmatprep.subr.bf16.mxu1 %v428_v39  ;;  %v432_v48 = vpack.c.bf16 %v100_v45, %v96_v43  ;;  %v99_v50 = vld [vmem:[#allocation8 + $0xf0] sm:$0xff]  ;;  %v104_v53 = vld [vmem:[#allocation8 + $0x118] sm:$0xff]  ;;  %v110_v55 = vld [vmem:[#allocation8 + $0x148] sm:$0xff]  ;;  %v398_v58 = vpack.c.bf16 %v105_v52, %v101_v47 }
  0x44   :  { %391 = vmatpush1.bf16.msra.mxu0 %v390_v32  ;;  %v108_v54 = vld [vmem:[#allocation8 + $0x138] sm:$0xff]  ;;  %v114_v56 = vld [vmem:[#allocation8 + $0x168] sm:$0xff]  ;;  %v434_v57 = vpack.c.bf16 %v99_v50, %v95_v49  ;;  %v109_v59 = vld [vmem:[#allocation8 + $0x140] sm:$0xff] }
  0x45   :  { %393 = vmatprep.subr.bf16.mxu0 %v392_v36  ;;  %v436_v60 = vpack.c.bf16 %v108_v54, %v104_v53  ;;  %v103_v61 = vld [vmem:[#allocation8 + $0x110] sm:$0xff]  ;;  %v400_v63 = vpack.c.bf16 %v114_v56, %v110_v55  ;;  %v113_v0 = vld [vmem:[#allocation8 + $0x160] sm:$0xff]  ;;  %v112_v1 = vld [vmem:[#allocation8 + $0x158] sm:$0xff] }
  0x46   :  { %431 = vmatpush1.bf16.msra.mxu1 %v430_v44  ;;  %v107_v62 = vld [vmem:[#allocation8 + $0x130] sm:$0xff]  ;;  %v116_v2 = vld [vmem:[#allocation8 + $0x178] sm:$0xff]  ;;  %v118_v3 = vld [vmem:[#allocation8 + $0x188] sm:$0xff]  ;;  %v402_v6 = vpack.c.bf16 %v113_v0, %v109_v59 }
  0x47   :  { %433 = vmatprep.subr.bf16.mxu1 %v432_v48  ;;  %v122_v4 = vld [vmem:[#allocation8 + $0x1a8] sm:$0xff]  ;;  %v438_v5 = vpack.c.bf16 %v107_v62, %v103_v61  ;;  %v117_v7 = vld [vmem:[#allocation8 + $0x180] sm:$0xff]  ;;  %v440_v8 = vpack.c.bf16 %v116_v2, %v112_v1  ;;  %v111_v9 = vld [vmem:[#allocation8 + $0x150] sm:$0xff]  ;;  %v151_v61 = vlaneseq }
  0x48   :  { %395 = vmatpush1.bf16.msra.mxu0 %v394_v46  ;;  %v115_v10 = vld [vmem:[#allocation8 + $0x170] sm:$0xff]  ;;  %v404_v11 = vpack.c.bf16 %v122_v4, %v118_v3  ;;  %v121_v12 = vld [vmem:[#allocation8 + $0x1a0] sm:$0xff]  ;;  %v120_v13 = vld [vmem:[#allocation8 + $0x198] sm:$0xff] }
  0x49   :  { %397 = vmatprep.subr.bf16.mxu0 %v396_v51  ;;  %v124_v14 = vld [vmem:[#allocation8 + $0x1b8] sm:$0xff]  ;;  %v126_v15 = vld [vmem:[#allocation8 + $0x1c8] sm:$0xff]  ;;  %v442_v17 = vpack.c.bf16 %v115_v10, %v111_v9  ;;  %v125_v18 = vld [vmem:[#allocation8 + $0x1c0] sm:$0xff]  ;;  %v406_v20 = vpack.c.bf16 %v121_v12, %v117_v7  ;;  %v152_v62 = vshrl.u32 %v151_v61, 7 }
  0x4a   :  { %435 = vmatpush1.bf16.msra.mxu1 %v434_v57  ;;  %v130_v16 = vld [vmem:[#allocation8 + $0x1e8] sm:$0xff]  ;;  %v129_v19 = vld [vmem:[#allocation8 + $0x1e0] sm:$0xff]  ;;  %v444_v21 = vpack.c.bf16 %v124_v14, %v120_v13  ;;  %v119_v22 = vld [vmem:[#allocation8 + $0x190] sm:$0xff] }
  0x4b   :  { %437 = vmatprep.subr.bf16.mxu1 %v436_v60  ;;  %v123_v23 = vld [vmem:[#allocation8 + $0x1b0] sm:$0xff]  ;;  %v62_v24 = vld [vmem:[#allocation3] sm:$0x3]  ;;  %v408_v25 = vpack.c.bf16 %v130_v16, %v126_v15  ;;  %v134_v29 = vld [vmem:[#allocation8 + $0x208] sm:$0xff]  ;;  %v410_v32 = vpack.c.bf16 %v129_v19, %v125_v18  ;;  %v157_v1 = vsub.s32 1, %v152_v62  ;;  %v161_v2 = vsub.s32 2, %v152_v62 }
  0x4c   :  { %399 = vmatpush1.bf16.msra.mxu0 %v398_v58  ;;  %v128_v26 = vld [vmem:[#allocation8 + $0x1d8] sm:$0xff]  ;;  %64 = vst.msk [vmem:[#allocation2] sm:$0x3] %vm63_vm0, %v62_v24  ;;  %v65_v28 = vld [vmem:[%s710_s1] sm:$0x3]  ;;  %v138_v30 = vld [vmem:[#allocation8 + $0x228] sm:$0xff]  ;;  %v446_v31 = vpack.c.bf16 %v123_v23, %v119_v22 }
  0x4d   :  { %401 = vmatprep.subr.bf16.mxu0 %v400_v63  ;;  %v132_v27 = vld [vmem:[#allocation8 + $0x1f8] sm:$0xff]  ;;  %67 = vst.msk [vmem:[#allocation2 + $0x2] sm:$0x3] %vm66_vm1, %v65_v28  ;;  %v133_v33 = vld [vmem:[#allocation8 + $0x200] sm:$0xff]  ;;  %v127_v35 = vld [vmem:[#allocation8 + $0x1d0] sm:$0xff]  ;;  %v412_v37 = vpack.c.bf16 %v138_v30, %v134_v29  ;;  %v153_v63 = vsub.s32 0, %v152_v62 }
  0x4e   :  { %439 = vmatpush1.bf16.msra.mxu1 %v438_v5  ;;  %v448_v34 = vpack.c.bf16 %v132_v27, %v128_v26  ;;  %v131_v36 = vld [vmem:[#allocation8 + $0x1f0] sm:$0xff]  ;;  %v137_v38 = vld [vmem:[#allocation8 + $0x220] sm:$0xff]  ;;  %v136_v39 = vld [vmem:[#allocation8 + $0x218] sm:$0xff]  ;;  %v165_v9 = vsub.s32 3, %v152_v62 }
  0x4f   :  { %441 = vmatprep.subr.bf16.mxu1 %v440_v8  ;;  %v140_v40 = vld [vmem:[#allocation8 + $0x238] sm:$0xff]  ;;  %v142_v41 = vld [vmem:[#allocation8 + $0x248] sm:$0xff]  ;;  %v450_v43 = vpack.c.bf16 %v131_v36, %v127_v35  ;;  %v141_v44 = vld [vmem:[#allocation8 + $0x240] sm:$0xff]  ;;  %v414_v45 = vpack.c.bf16 %v137_v38, %v133_v33 }
  0x50   :  { %403 = vmatpush1.bf16.msra.mxu0 %v402_v6  ;;  %v146_v42 = vld [vmem:[#allocation8 + $0x268] sm:$0xff]  ;;  %v145_v46 = vld [vmem:[#allocation8 + $0x260] sm:$0xff]  ;;  %v452_v47 = vpack.c.bf16 %v140_v40, %v136_v39  ;;  %v135_v48 = vld [vmem:[#allocation8 + $0x210] sm:$0xff] }
  0x51   :  { %405 = vmatprep.subr.bf16.mxu0 %v404_v11  ;;  %v139_v49 = vld [vmem:[#allocation8 + $0x230] sm:$0xff]  ;;  %v416_v50 = vpack.c.bf16 %v146_v42, %v142_v41  ;;  %v144_v52 = vld [vmem:[#allocation8 + $0x258] sm:$0xff]  ;;  %v418_v56 = vpack.c.bf16 %v145_v46, %v141_v44 }
  0x52   :  { %443 = vmatpush1.bf16.msra.mxu1 %v442_v17  ;;  %v148_v53 = vld [vmem:[#allocation8 + $0x278] sm:$0xff]  ;;  %v454_v55 = vpack.c.bf16 %v139_v49, %v135_v48  ;;  %v143_v58 = vld [vmem:[#allocation8 + $0x250] sm:$0xff] }
  0x53   :  { %445 = vmatprep.subr.bf16.mxu1 %v444_v21  ;;  %v456_v57 = vpack.c.bf16 %v148_v53, %v144_v52  ;;  %v147_v59 = vld [vmem:[#allocation8 + $0x270] sm:$0xff] }
  0x54   :  { %407 = vmatpush1.bf16.msra.mxu0 %v406_v20  ;;  %v377_v51 = vld.sshfl [vmem:[#allocation2] sm:$0x33 pattern:$0x76325410]  ;;  %v458_v60 = vpack.c.bf16 %v147_v59, %v143_v58  ;;  %v149_v0 = vld [vmem:[%s713_s4] sm:$0xf] }
  0x55   :  { %409 = vmatprep.subr.bf16.mxu0 %v408_v25  ;;  %v179_v54 = vcombine.high %v377_v51, %v377_v51  ;;  %v154_v3 = vrot.slane %v149_v0, %v153_v63  ;;  %v158_v4 = vrot.slane %v149_v0, %v157_v1  ;;  %v162_v6 = vrot.slane %v149_v0, %v161_v2  ;;  %v339_v25 = vld [vmem:[#allocation6] sm:$0x3]  ;;  %s602_s4 = smov [#allocation10]  }
  0x56   :  { %447 = vmatpush1.bf16.msra.mxu1 %v446_v31  ;;  %v166_v16 = vrot.slane %v149_v0, %v165_v9  ;;  %s363_s11 = sshll.u32 %s602_s4, 4  ;;  %s364_s11 = int_to_ptr.vmem [resolvable:$true] %s363_s11 }
  0x57   :  { %449 = vmatprep.subr.bf16.mxu1 %v448_v34  ;;  %378 = vmatprep.mubr.msk.f32.mxu0 %vm181_vm2, %v179_v54  ;;  %s544_s12 = scalar_lea.vmem %s364_s11, 32  ;;  %p549_p11 = scmp.lt.s32.totalorder %s364_s11, %s364_s11 }
  0x58   :  { %411 = vmatpush1.bf16.msra.mxu0 %v410_v32  ;;  %379 = vmatprep.mubr.msk.f32.mxu1 %vm181_vm2, %v179_v54  ;;  %p545_p10 = scmp.ne.s32.totalorder %s364_s11, %s544_s12  ;;  %p550_p12 = scmp.lt.s32.totalorder %s544_s12, %s544_s12 }
  0x59   :  { %413 = vmatprep.subr.bf16.mxu0 %v412_v37 }
  0x5a   :  { %451 = vmatpush1.bf16.msra.mxu1 %v450_v43  ;;  %p551_p13 = por %p550_p12, %p549_p11 }
  0x5b   :  { %453 = vmatprep.subr.bf16.mxu1 %v452_v47 }
  0x5c   :  { %415 = vmatpush1.bf16.msra.mxu0 %v414_v45  ;;  %p552_p0 = pnand %p551_p13, %p545_p10 }
  0x5d   :  { %417 = vmatprep.subr.bf16.mxu0 %v416_v50 }
  0x5e   :  { %455 = vmatpush1.bf16.msra.mxu1 %v454_v55 }
  0x5f   :  { %457 = vmatprep.subr.bf16.mxu1 %v456_v57 }
  0x60   :  { %419 = vmatpush1.bf16.msra.mxu0 %v418_v56 }
  0x62   :  { %459 = vmatpush1.bf16.msra.mxu1 %v458_v60 }
  0x63   :  { %249 = vmatmul.mubr.f32.vlgmr.msra.gmra.mrb[0].mxu0 %v377_v51 }
  0x65   :  { %320 = vmatmul.mubr.f32.vlgmr.msra.gmra.mrb[0].mxu1 %v377_v51 }
 0x136   :  { %v250_v5 = vpop.f32.mrb[0].mxu0 }
 0x137   :  { %v251_v7 = vadd.f32 %v250_v5, %v154_v3  ;;  %v252_v8 = vpop.f32.mrb[1].mxu0 }
 0x138   :  { %v253_v10 = vadd.f32 %v252_v8, %v158_v4  ;;  %v321_v12 = vpop.f32.mrb[0].mxu1 }
 0x139   :  { %v326_v11 = vmul.f32 0.5, %v251_v7  ;;  %v322_v14 = vadd.f32 %v321_v12, %v162_v6  ;;  %v323_v15 = vpop.f32.mrb[1].mxu1 }
 0x13a   :  { %v330_v13 = vmul.f32 0.5, %v253_v10  ;;  %v324_v17 = vadd.f32 %v323_v15, %v166_v16 }
 0x13b   :  { %468 = vtanh.f32 %v326_v11 }
 0x13c   :  { %470 = vtanh.f32 %v330_v13  ;;  %v335_v18 = vmul.f32 0.5, %v324_v17 }
 0x13d   :  { %472 = vtanh.f32 %v322_v14 }
 0x13e   :  { %474 = vtanh.f32 %v335_v18 }
 0x145   :  { %v469_v19 = vpop.eup %468 }
 0x146   :  { %v471_v20 = vpop.eup %470  ;;  %v328_v21 = vmul.f32 0.5, %v469_v19 }
 0x147   :  { %v473_v22 = vpop.eup %472  ;;  %v332_v23 = vmul.f32 0.5, %v471_v20 }
 0x148   :  { %v329_v24 = vadd.f32 0.5, %v328_v21 }
 0x149   :  { %v333_v26 = vadd.f32 0.5, %v332_v23 }
 0x14a   :  { %v341_v27 = vmul.f32 %v473_v22, %v329_v24 }
 0x14b   :  { %v340_v28 = vmul.f32 %v339_v25, %v333_v26 }
 0x14d   :  { %v342_v29 = vadd.f32 %v341_v27, %v340_v28 }
 0x14f   :  { %476 = vtanh.f32 %v342_v29  ;;  %346 = vst.msk [vmem:[#allocation10] sm:$0x3] %vm66_vm1, %v342_v29 }
 0x150   :  { %555 = shalt.err (!%p552_p0)
}
 0x151   :  { %s556_s15 = scalar_lea.hbm %s715_s6, 32 }
 0x152   :  { %p557_p1 = scmp.ne.s32.totalorder %s715_s6, %s556_s15  ;;  %p560_p2 = scmp.lt.u32.totalorder %s556_s15, %s715_s6 }
 0x154   :  { %p562_p3 = pnand %p560_p2, %p557_p1 }
 0x156   :  { %565 = shalt.err (!%p562_p3)
}
 0x157   :  { %366 = dma.vmem_to_hbm [thread:$0]  %s364_s11, 32, %s715_s6, [#allocation11]   ;;  %v475_v30 = vpop.eup %474 }
 0x158   :  { %v337_v31 = vmul.f32 0.5, %v475_v30  ;;  %s603_s21 = smov [#allocation9]  }
 0x159   :  { %s353_s22 = sshll.u32 %s603_s21, 4  ;;  %v477_v33 = vpop.eup %476  ;;  %s354_s22 = int_to_ptr.vmem [resolvable:$true] %s353_s22 }
 0x15a   :  { %v338_v32 = vadd.f32 0.5, %v337_v31  ;;  %s566_s23 = scalar_lea.vmem %s354_s22, 32  ;;  %p571_p5 = scmp.lt.s32.totalorder %s354_s22, %s354_s22 }
 0x15b   :  { %p567_p4 = scmp.ne.s32.totalorder %s354_s22, %s566_s23  ;;  %p572_p6 = scmp.lt.s32.totalorder %s566_s23, %s566_s23 }
 0x15c   :  { %v344_v34 = vmul.f32 %v477_v33, %v338_v32 }
 0x15d   :  { %p573_p7 = por %p572_p6, %p571_p5 }
 0x15e   :  { %345 = vst.msk [vmem:[#allocation9] sm:$0x3] %vm66_vm1, %v344_v34 }
 0x15f   :  { %p574_p8 = pnand %p573_p7, %p567_p4 }
 0x161   :  { %577 = shalt.err (!%p574_p8)
}
 0x162   :  { %s578_s6 = scalar_lea.hbm %s714_s5, 32 }
 0x163   :  { %p579_p9 = scmp.ne.s32.totalorder %s714_s5, %s578_s6  ;;  %p582_p10 = scmp.lt.u32.totalorder %s578_s6, %s714_s5 }
 0x165   :  { %p584_p11 = pnand %p582_p10, %p579_p9 }
 0x167   :  { %587 = shalt.err (!%p584_p11)
}
 0x168   :  { %356 = dma.vmem_to_hbm [thread:$0]  %s354_s22, 32, %s714_s5, [#allocation5]  }
 0x169   :  { %592 = dma.done.wait [#allocation5], 32  }
 0x16a   :  { %593 = vsyncadd [#allocation5], 4294967264 }
 0x16b   :  { %594 = dma.done.wait [#allocation11], 32  }
 0x16c   :  { %595 = vsyncadd [#allocation11], 4294967264 }
 0x16d   :  { %373 = vsyncpa [#allocation4], 1 }
 0x16e   :  { %374 = vsyncpa [#allocation7], 1 }
 0x16f   :  { %375 = vsyncpa [#allocation5], 1 }
 0x170   :  { %376 = vsyncpa [#allocation11], 1 }

</bundles_post_ra>
